<compile_context>
chip_gen: v7x
topology: tpu7x:2x2x1
jax: 0.10.0
libtpu: 0.0.40
codegen_flags: <defaults>
</compile_context>

<pallas_src>
import functools

import jax
import jax.numpy as jnp
from jax.experimental import pallas as pl
from jax.experimental.pallas import tpu as pltpu


def _actor_mlp_kernel(x_ref, w1_ref, b1_ref, w2_ref, b2_ref, w3_ref, b3_ref,
                      o_ref):
    """Whole 3-layer MLP for one batch tile, fully resident in VMEM."""
    cdt = w1_ref.dtype  # matmul input dtype (bf16 or f32); accumulate in f32

    # Layer 1: Linear + ReLU (MXU, f32 accumulate; bias/ReLU epilogue in f32).
    h = jnp.dot(x_ref[...].astype(cdt), w1_ref[...],
                preferred_element_type=jnp.float32)
    h = jnp.maximum(h + b1_ref[...], 0.0)

    # Layer 2: Linear + ReLU.
    h = jnp.dot(h.astype(cdt), w2_ref[...], preferred_element_type=jnp.float32)
    h = jnp.maximum(h + b2_ref[...], 0.0)

    # Layer 3: Linear + Tanh (tanh uses the EUP slot; lane-dense store).
    h = jnp.dot(h.astype(cdt), w3_ref[...], preferred_element_type=jnp.float32)
    o_ref[...] = jnp.tanh(h + b3_ref[...]).astype(o_ref.dtype)


def _round_up(x, m):
    return ((x + m - 1) // m) * m


def init_actor_params(key, state_size, action_embedding_dim, hidden_size=256):
    """torch.nn.Linear-style init; weights stored as (in_features, out_features)."""
    def linear(k, fan_in, fan_out):
        kw, kb = jax.random.split(k)
        bound = 1.0 / jnp.sqrt(jnp.float32(fan_in))
        w = jax.random.uniform(kw, (fan_in, fan_out), jnp.float32, -bound, bound)
        b = jax.random.uniform(kb, (1, fan_out), jnp.float32, -bound, bound)
        return w, b

    k1, k2, k3 = jax.random.split(key, 3)
    w1, b1 = linear(k1, state_size, hidden_size)
    w2, b2 = linear(k2, hidden_size, hidden_size)
    w3, b3 = linear(k3, hidden_size, action_embedding_dim)
    return {"w1": w1, "b1": b1, "w2": w2, "b2": b2, "w3": w3, "b3": b3}


def prepare_actor_params(params, compute_dtype=jnp.bfloat16):
    """One-time weight prep, hoisted out of the per-call hot path.

    * w3/b3 zero-padded along output features to a multiple of 128 so the
      kernel's final store is an unmasked lane-dense vst.
    * w1/w2/w3 cast to compute_dtype (default bf16: halves weight DMA and
      MXU passes on v5e/v6e/v7x); biases stay f32 for the f32 epilogue.
    Returns (kernel_params_dict, action_dim).
    """
    cdt = jnp.dtype(compute_dtype)
    w3, b3 = params["w3"], params["b3"]
    A = w3.shape[1]
    A_pad = _round_up(max(A, 128), 128)
    if A_pad != A:
        w3 = jnp.pad(w3, ((0, 0), (0, A_pad - A)))
        b3 = jnp.pad(b3, ((0, 0), (0, A_pad - A)))
    kparams = {
        "w1": params["w1"].astype(cdt),
        "b1": params["b1"].astype(jnp.float32),
        "w2": params["w2"].astype(cdt),
        "b2": params["b2"].astype(jnp.float32),
        "w3": w3.astype(cdt),
        "b3": b3.astype(jnp.float32),
    }
    return kparams, A


def _pick_batch_tile(B):
    # Single step for small batches; exactly 2 parallel steps for mid-size
    # batches (both v7x TensorCores get work; neutral on single-TC v5e/v6e);
    # 1024-row tiles for large batches so per-step overhead is amortized.
    if B <= 256:
        return _round_up(B, 16)
    if B <= 2048:
        return _round_up((B + 1) // 2, 256)
    return 1024


@functools.partial(jax.jit,
                   static_argnames=("action_dim", "batch_tile", "out_dtype"))
def actor_forward(x, kparams, *, action_dim, batch_tile=None,
                  out_dtype=jnp.float32):
    """Pallas forward of ActorNetwork; kparams from prepare_actor_params()."""
    # Glue matching the PyTorch forward's dtype / squeeze(0) handling.
    x = x.astype(jnp.float32)
    if x.ndim > 2 and x.shape[0] == 1:   # torch squeeze(0) is a no-op otherwise
        x = jnp.squeeze(x, axis=0)
    lead_shape = x.shape[:-1]
    S = x.shape[-1]
    x = x.reshape(-1, S)                 # Linear acts on the last dim
    B = x.shape[0]

    w1, b1 = kparams["w1"], kparams["b1"]
    w2, b2 = kparams["w2"], kparams["b2"]
    w3, b3 = kparams["w3"], kparams["b3"]
    H = w1.shape[1]
    A_pad = w3.shape[1]
    A = action_dim

    bt = _pick_batch_tile(B) if batch_tile is None else batch_tile
    B_pad = _round_up(B, bt)
    if B_pad != B:
        x = jnp.pad(x, ((0, B_pad - B), (0, 0)))
    grid = (B_pad // bt,)
    tiled = grid[0] > 1

    # Grid-invariant weights/biases: single-buffer on the tiled path so a
    # larger hidden_size still fits v7x's 64 MiB VMEM.
    def inv_spec(shape):
        if tiled:
            return pl.BlockSpec(shape, lambda i: (0, 0),
                                pipeline_mode=pl.Buffered(1))
        return pl.BlockSpec(shape, lambda i: (0, 0))

    in_specs = [
        pl.BlockSpec((bt, S), lambda i: (i, 0)),  # x (f32; cast in-kernel)
        inv_spec((S, H)),                         # w1
        inv_spec((1, H)),                         # b1
        inv_spec((H, H)),                         # w2
        inv_spec((1, H)),                         # b2
        inv_spec((H, A_pad)),                     # w3 (lane-padded)
        inv_spec((1, A_pad)),                     # b3 (lane-padded)
    ]
    out_specs = pl.BlockSpec((bt, A_pad), lambda i: (i, 0))

    flops = 2 * B_pad * (S * H + H * H + H * A_pad)
    bytes_accessed = (
        x.size * x.dtype.itemsize
        + sum(a.size * a.dtype.itemsize for a in (w1, b1, w2, b2, w3, b3))
        + B_pad * A_pad * jnp.dtype(out_dtype).itemsize)
    cost = pl.CostEstimate(flops=flops, transcendentals=B_pad * A_pad,
                           bytes_accessed=bytes_accessed)

    out = pl.pallas_call(
        _actor_mlp_kernel,
        out_shape=jax.ShapeDtypeStruct((B_pad, A_pad), jnp.dtype(out_dtype)),
        grid=grid,
        in_specs=in_specs,
        out_specs=out_specs,
        compiler_params=pltpu.CompilerParams(
            dimension_semantics=("parallel",) if tiled else ("arbitrary",)),
        cost_estimate=cost,
    )(x, w1, b1, w2, b2, w3, b3)

    out = out[:B, :A]                     # drop batch + lane padding
    return out.reshape(*lead_shape, A)


def _reference_forward(x, params):
    """Plain-JAX reference of the same MLP for correctness checks."""
    x = x.astype(jnp.float32)
    if x.ndim > 2 and x.shape[0] == 1:
        x = jnp.squeeze(x, axis=0)
    h = jnp.maximum(x @ params["w1"] + params["b1"], 0.0)
    h = jnp.maximum(h @ params["w2"] + params["b2"], 0.0)
    return jnp.tanh(h @ params["w3"] + params["b3"])


if __name__ == "__main__":
    key = jax.random.PRNGKey(0)
    k_param, k_x, k_x2, k_x3 = jax.random.split(key, 4)

    state_size = 32
    action_embedding_dim = 16
    hidden_size = 256  # module default

    params = init_actor_params(k_param, state_size, action_embedding_dim,
                               hidden_size=hidden_size)

    # One-time (hoisted) weight prep: exact f32 path + default bf16 fast path.
    kp_f32, A = prepare_actor_params(params, compute_dtype=jnp.float32)
    kp_bf16, _ = prepare_actor_params(params)  # bf16 default

    # 1) Small batch, f32 path: single grid step, exact vs. reference.
    x_small = jax.random.normal(k_x, (16, state_size), dtype=jnp.float32)
    ref = _reference_forward(x_small, params)
    out = jax.block_until_ready(actor_forward(x_small, kp_f32, action_dim=A))
    assert out.shape == (16, action_embedding_dim)
    assert jnp.max(jnp.abs(out - ref)) < 1e-5

    # 2) Small batch, bf16 fast path (pre-cast weights): looser tolerance.
    out_bf = jax.block_until_ready(actor_forward(x_small, kp_bf16, action_dim=A))
    assert jnp.max(jnp.abs(out_bf - ref)) < 5e-2

    # 3) Odd batch + 3-D input (torch-style squeeze(0) path, batch padding).
    x_odd = jax.random.normal(k_x2, (1, 5, state_size), dtype=jnp.float32)
    out_odd = jax.block_until_ready(actor_forward(x_odd, kp_f32, action_dim=A))
    ref_odd = _reference_forward(x_odd, params)
    assert out_odd.shape == (5, action_embedding_dim)
    assert jnp.max(jnp.abs(out_odd - ref_odd)) < 1e-5

    # 4) Tiled path: 512 rows -> two parallel 256-row tiles (both v7x TCs),
    #    bf16 weights, single-buffered invariant specs, bf16 writeback.
    x_big = jax.random.normal(k_x3, (512, state_size), dtype=jnp.float32)
    out_big = jax.block_until_ready(
        actor_forward(x_big, kp_bf16, action_dim=A, out_dtype=jnp.bfloat16))
    ref_big = _reference_forward(x_big, params)
    assert out_big.shape == (512, action_embedding_dim)
    assert jnp.max(jnp.abs(out_big.astype(jnp.float32) - ref_big)) < 5e-2

    print("KERNEL_OK")
</pallas_src>

<mosaic_0001>
module attributes {stable_mosaic.version = 11 : i64} {
  func.func @_actor_mlp_kernel(%arg0: i32, %arg1: memref<16x32xf32, #tpu.memory_space<vmem>>, %arg2: memref<32x256xf32, #tpu.memory_space<vmem>>, %arg3: memref<1x256xf32, #tpu.memory_space<vmem>>, %arg4: memref<256x256xf32, #tpu.memory_space<vmem>>, %arg5: memref<1x256xf32, #tpu.memory_space<vmem>>, %arg6: memref<256x128xf32, #tpu.memory_space<vmem>>, %arg7: memref<1x128xf32, #tpu.memory_space<vmem>>, %arg8: memref<16x128xf32, #tpu.memory_space<vmem>>) attributes {dimension_semantics = [#tpu.dimension_semantics<arbitrary>], iteration_bounds = array<i64: 1>, scalar_prefetch = 0 : i64, scratch_operands = 0 : i64, tpu.core_type = #tpu.core_type<tc>, window_params = [{transform_indices = @transform_0, window_bounds = array<i64: 16, 32>}, {pipeline_mode = #tpu.pipeline_mode<synchronous>, transform_indices = @transform_1, window_bounds = array<i64: 32, 256>}, {pipeline_mode = #tpu.pipeline_mode<synchronous>, transform_indices = @transform_2, window_bounds = array<i64: 1, 256>}, {pipeline_mode = #tpu.pipeline_mode<synchronous>, transform_indices = @transform_3, window_bounds = array<i64: 256, 256>}, {pipeline_mode = #tpu.pipeline_mode<synchronous>, transform_indices = @transform_4, window_bounds = array<i64: 1, 256>}, {pipeline_mode = #tpu.pipeline_mode<synchronous>, transform_indices = @transform_5, window_bounds = array<i64: 256, 128>}, {pipeline_mode = #tpu.pipeline_mode<synchronous>, transform_indices = @transform_6, window_bounds = array<i64: 1, 128>}, {transform_indices = @transform_7, window_bounds = array<i64: 16, 128>}]} {
    %c0 = arith.constant 0 : index
    %c0_0 = arith.constant 0 : index
    %0 = vector.load %arg1[%c0, %c0_0] : memref<16x32xf32, #tpu.memory_space<vmem>>, vector<16x32xf32>
    %c0_1 = arith.constant 0 : index
    %c0_2 = arith.constant 0 : index
    %1 = vector.load %arg2[%c0_1, %c0_2] : memref<32x256xf32, #tpu.memory_space<vmem>>, vector<32x256xf32>
    %cst = arith.constant dense<0.000000e+00> : vector<16x256xf32>
    %2 = tpu.matmul %0, %1, %cst {dimension_numbers = #tpu.dot_dimension_numbers<[1], [0], [0], [1], [0, 0, 1, 1], [], []>} : vector<16x32xf32>, vector<32x256xf32>, vector<16x256xf32> -> vector<16x256xf32>
    %c0_3 = arith.constant 0 : index
    %c0_4 = arith.constant 0 : index
    %3 = vector.load %arg3[%c0_3, %c0_4] : memref<1x256xf32, #tpu.memory_space<vmem>>, vector<1x256xf32>
    %4 = vector.broadcast %3 : vector<1x256xf32> to vector<16x256xf32>
    %5 = arith.addf %2, %4 : vector<16x256xf32>
    %cst_5 = arith.constant 0.000000e+00 : f32
    %6 = vector.broadcast %cst_5 : f32 to vector<16x256xf32>
    %7 = arith.maximumf %5, %6 : vector<16x256xf32>
    %c0_6 = arith.constant 0 : index
    %c0_7 = arith.constant 0 : index
    %8 = vector.load %arg4[%c0_6, %c0_7] : memref<256x256xf32, #tpu.memory_space<vmem>>, vector<256x256xf32>
    %cst_8 = arith.constant dense<0.000000e+00> : vector<16x256xf32>
    %9 = tpu.matmul %7, %8, %cst_8 {dimension_numbers = #tpu.dot_dimension_numbers<[1], [0], [0], [1], [0, 0, 1, 1], [], []>} : vector<16x256xf32>, vector<256x256xf32>, vector<16x256xf32> -> vector<16x256xf32>
    %c0_9 = arith.constant 0 : index
    %c0_10 = arith.constant 0 : index
    %10 = vector.load %arg5[%c0_9, %c0_10] : memref<1x256xf32, #tpu.memory_space<vmem>>, vector<1x256xf32>
    %11 = vector.broadcast %10 : vector<1x256xf32> to vector<16x256xf32>
    %12 = arith.addf %9, %11 : vector<16x256xf32>
    %cst_11 = arith.constant 0.000000e+00 : f32
    %13 = vector.broadcast %cst_11 : f32 to vector<16x256xf32>
    %14 = arith.maximumf %12, %13 : vector<16x256xf32>
    %c0_12 = arith.constant 0 : index
    %c0_13 = arith.constant 0 : index
    %15 = vector.load %arg6[%c0_12, %c0_13] : memref<256x128xf32, #tpu.memory_space<vmem>>, vector<256x128xf32>
    %cst_14 = arith.constant dense<0.000000e+00> : vector<16x128xf32>
    %16 = tpu.matmul %14, %15, %cst_14 {dimension_numbers = #tpu.dot_dimension_numbers<[1], [0], [0], [1], [0, 0, 1, 1], [], []>} : vector<16x256xf32>, vector<256x128xf32>, vector<16x128xf32> -> vector<16x128xf32>
    %c0_15 = arith.constant 0 : index
    %c0_16 = arith.constant 0 : index
    %17 = vector.load %arg7[%c0_15, %c0_16] : memref<1x128xf32, #tpu.memory_space<vmem>>, vector<1x128xf32>
    %18 = vector.broadcast %17 : vector<1x128xf32> to vector<16x128xf32>
    %19 = arith.addf %16, %18 : vector<16x128xf32>
    %20 = math.tanh %19 : vector<16x128xf32>
    %c0_17 = arith.constant 0 : index
    %c0_18 = arith.constant 0 : index
    %21 = vector.load %arg8[%c0_17, %c0_18] : memref<16x128xf32, #tpu.memory_space<vmem>>, vector<16x128xf32>
    tpu.vector_store %arg8[%c0_17, %c0_18], %20 {strides = array<i32>} : memref<16x128xf32, #tpu.memory_space<vmem>>, vector<16x128xf32>,
    return
  }
  func.func @transform_0(%arg0: i32) -> (i32, i32) {
    %c0_i32 = arith.constant 0 : i32
    %c0_i32_0 = arith.constant 0 : i32
    return %arg0, %c0_i32 : i32, i32
  }
  func.func @transform_1(%arg0: i32) -> (i32, i32) {
    %c0_i32 = arith.constant 0 : i32
    %c0_i32_0 = arith.constant 0 : i32
    %c0_i32_1 = arith.constant 0 : i32
    return %c0_i32, %c0_i32_0 : i32, i32
  }
  func.func @transform_2(%arg0: i32) -> (i32, i32) {
    %c0_i32 = arith.constant 0 : i32
    %c0_i32_0 = arith.constant 0 : i32
    %c0_i32_1 = arith.constant 0 : i32
    return %c0_i32, %c0_i32_0 : i32, i32
  }
  func.func @transform_3(%arg0: i32) -> (i32, i32) {
    %c0_i32 = arith.constant 0 : i32
    %c0_i32_0 = arith.constant 0 : i32
    %c0_i32_1 = arith.constant 0 : i32
    return %c0_i32, %c0_i32_0 : i32, i32
  }
  func.func @transform_4(%arg0: i32) -> (i32, i32) {
    %c0_i32 = arith.constant 0 : i32
    %c0_i32_0 = arith.constant 0 : i32
    %c0_i32_1 = arith.constant 0 : i32
    return %c0_i32, %c0_i32_0 : i32, i32
  }
  func.func @transform_5(%arg0: i32) -> (i32, i32) {
    %c0_i32 = arith.constant 0 : i32
    %c0_i32_0 = arith.constant 0 : i32
    %c0_i32_1 = arith.constant 0 : i32
    return %c0_i32, %c0_i32_0 : i32, i32
  }
  func.func @transform_6(%arg0: i32) -> (i32, i32) {
    %c0_i32 = arith.constant 0 : i32
    %c0_i32_0 = arith.constant 0 : i32
    %c0_i32_1 = arith.constant 0 : i32
    return %c0_i32, %c0_i32_0 : i32, i32
  }
  func.func @transform_7(%arg0: i32) -> (i32, i32) {
    %c0_i32 = arith.constant 0 : i32
    %c0_i32_0 = arith.constant 0 : i32
    return %arg0, %c0_i32 : i32, i32
  }
}

</mosaic_0001>

<bundles_post_ra>
// kernel: actor_forward.1
= control target key start
LH: loop header
LB: loop body
LE: loop exit
PB: predicated region body
PF: predicated region fallthrough
CT: control target
= control target key end

     0   :  { %12 = vsyncpa [#allocation3], 0  ;;  %s906_s0 = inlined_call_operand.hbm [shape: f32[16,32], index: 0, kind: input, shape index: {}]   ;;  %s907_s1 = inlined_call_operand.hbm [shape: f32[32,256], index: 1, kind: input, shape index: {}]   ;;  %s908_s2 = inlined_call_operand.vmem [shape: f32[1,256], index: 2, kind: input, shape index: {}]   ;;  %s909_s3 = inlined_call_operand.hbm [shape: f32[256,256], index: 3, kind: input, shape index: {}]   ;;  %s910_s4 = inlined_call_operand.vmem [shape: f32[1,256], index: 4, kind: input, shape index: {}]   ;;  %s911_s5 = inlined_call_operand.hbm [shape: f32[256,128], index: 5, kind: input, shape index: {}]   ;;  %s912_s6 = inlined_call_operand.vmem [shape: f32[1,128], index: 6, kind: input, shape index: {}]   ;;  %s913_s7 = inlined_call_operand.hbm [shape: f32[16,128], index: 7, kind: output, shape index: {}]  }
   0x1   :  { %13 = vsyncpa [#allocation6], 0 }
   0x2   :  { %14 = vsyncpa [#allocation9], 0 }
   0x3   :  { %15 = vsyncpa [#allocation4], 0  ;;  %s763_s24 = smov [#allocation5]   ;;  %s645_s28 = scalar_lea.hbm %s907_s1, 1024 }
   0x4   :  { %s33_s25 = sshll.u32 %s763_s24, 4  ;;  %p646_p0 = scmp.ne.s32.totalorder %s907_s1, %s645_s28  ;;  %s34_s25 = int_to_ptr.vmem [resolvable:$true] %s33_s25 }
   0x5   :  { %p649_p1 = scmp.lt.u32.totalorder %s645_s28, %s907_s1 }
   0x7   :  { %p651_p2 = pnand %p649_p1, %p646_p0 }
   0x9   :  { %654 = shalt.err (!%p651_p2)
}
   0xa   :  { %s655_s10 = scalar_lea.vmem %s34_s25, 1024  ;;  %p660_p4 = scmp.lt.s32.totalorder %s34_s25, %s34_s25 }
   0xb   :  { %p656_p3 = scmp.ne.s32.totalorder %s34_s25, %s655_s10  ;;  %p661_p5 = scmp.lt.s32.totalorder %s655_s10, %s655_s10 }
   0xd   :  { %p662_p6 = por %p661_p5, %p660_p4 }
   0xf   :  { %p663_p7 = pnand %p662_p6, %p656_p3 }
  0x11   :  { %666 = shalt.err (!%p663_p7)
}
  0x12   :  { %s764_s11 = smov 256   ;;  %s765_s12 = smov 16  }
  0x13   :  { %39 = dma.hbm_to_vmem [thread:$0]  %s907_s1, 1024, %s34_s25, [#allocation6], %s764_s11, %s764_s11, %s765_s12  }
  0x14   :  { %s766_s15 = smov [#allocation2]   ;;  %s667_s19 = scalar_lea.hbm %s906_s0, 256 }
  0x15   :  { %s21_s16 = sshll.u32 %s766_s15, 4  ;;  %p668_p8 = scmp.ne.s32.totalorder %s906_s0, %s667_s19  ;;  %s22_s16 = int_to_ptr.vmem [resolvable:$true] %s21_s16 }
  0x16   :  { %p671_p9 = scmp.lt.u32.totalorder %s667_s19, %s906_s0 }
  0x18   :  { %p673_p10 = pnand %p671_p9, %p668_p8 }
  0x1a   :  { %676 = shalt.err (!%p673_p10)
}
  0x1b   :  { %s677_s24 = scalar_lea.vmem %s22_s16, 256  ;;  %p682_p12 = scmp.lt.s32.totalorder %s22_s16, %s22_s16 }
  0x1c   :  { %p678_p11 = scmp.ne.s32.totalorder %s22_s16, %s677_s24  ;;  %p683_p13 = scmp.lt.s32.totalorder %s677_s24, %s677_s24 }
  0x1e   :  { %p684_p0 = por %p683_p13, %p682_p12 }
  0x20   :  { %p685_p1 = pnand %p684_p0, %p678_p11 }
  0x22   :  { %688 = shalt.err (!%p685_p1)
}
  0x23   :  { %s767_s1 = smov 128   ;;  %s768_s25 = smov 8  }
  0x24   :  { %27 = dma.hbm_to_vmem [thread:$0]  %s906_s0, 256, %s22_s16, [#allocation3], %s767_s1, %s767_s1, %s768_s25  }
  0x25   :  { %s769_s28 = smov [#allocation7]   ;;  %s770_s30 = smov [#allocation8]  }
  0x26   :  { %s47_s29 = sshll.u32 %s769_s28, 4  ;;  %s61_s8 = sshll.u32 %s770_s30, 4  ;;  %s48_s29 = int_to_ptr.vmem [resolvable:$true] %s47_s29  ;;  %s843_s8 = int_to_ptr.vmem [resolvable:$true] %s61_s8 }
  0x27   :  { %s689_s13 = scalar_lea.hbm %s909_s3, 8192 }
  0x28   :  { %p690_p2 = scmp.ne.s32.totalorder %s909_s3, %s689_s13  ;;  %p693_p3 = scmp.lt.u32.totalorder %s689_s13, %s909_s3 }
  0x2a   :  { %p695_p4 = pnand %p693_p3, %p690_p2 }
  0x2c   :  { %698 = shalt.err (!%p695_p4)
}
  0x2d   :  { %s699_s0 = scalar_lea.vmem %s48_s29, 8192  ;;  %p704_p6 = scmp.lt.s32.totalorder %s48_s29, %s48_s29 }
  0x2e   :  { %p700_p5 = scmp.ne.s32.totalorder %s48_s29, %s699_s0  ;;  %p705_p7 = scmp.lt.s32.totalorder %s699_s0, %s699_s0 }
  0x30   :  { %p706_p8 = por %p705_p7, %p704_p6 }
  0x32   :  { %p707_p9 = pnand %p706_p8, %p700_p5 }
  0x34   :  { %710 = shalt.err (!%p707_p9)
}
  0x35   :  { %53 = dma.hbm_to_vmem [thread:$0]  %s909_s3, 8192, %s48_s29, [#allocation6], %s764_s11, %s764_s11, %s765_s12  }
  0x36   :  { %s711_s22 = scalar_lea.hbm %s911_s5, 4096 }
  0x37   :  { %p712_p10 = scmp.ne.s32.totalorder %s911_s5, %s711_s22  ;;  %p715_p11 = scmp.lt.u32.totalorder %s711_s22, %s911_s5 }
  0x39   :  { %p717_p12 = pnand %p715_p11, %p712_p10 }
  0x3b   :  { %720 = shalt.err (!%p717_p12)
}
  0x3c   :  { %s721_s28 = scalar_lea.vmem %s843_s8, 4096  ;;  %p726_p0 = scmp.lt.s32.totalorder %s843_s8, %s843_s8 }
  0x3d   :  { %p722_p13 = scmp.ne.s32.totalorder %s843_s8, %s721_s28  ;;  %p727_p1 = scmp.lt.s32.totalorder %s721_s28, %s721_s28 }
  0x3f   :  { %p728_p2 = por %p727_p1, %p726_p0 }
  0x41   :  { %p729_p3 = pnand %p728_p2, %p722_p13 }
  0x43   :  { %732 = shalt.err (!%p729_p3)
}
  0x44   :  { %67 = dma.hbm_to_vmem [thread:$0]  %s911_s5, 4096, %s843_s8, [#allocation9], %s767_s1, %s767_s1, %s768_s25  }
  0x45   :  { %755 = dma.done.wait [#allocation3], 256  }
  0x46   :  { %756 = vsyncadd [#allocation3], 4294967040 }
  0x47   :  { %757 = dma.done.wait [#allocation6], 9216  }
  0x48   :  { %758 = vsyncadd [#allocation6], 4294958080 }
  0x49   :  { %759 = dma.done.wait [#allocation9], 4096  }
  0x4a   :  { %760 = vsyncadd [#allocation9], 4294963200  ;;  %v771_v0 = vmov 0.0   ;;  %v85_v1 = vld [vmem:[#allocation5 + $0x8] sm:$0xff]  ;;  %v87_v2 = vld [vmem:[#allocation5 + $0x18] sm:$0xff]  ;;  %vm104_vm0 = vcmask 261120  }
  0x4b   :  { %175 = vmatprep.mubr.f32.mxu0 %v771_v0  ;;  %v84_v3 = vld [vmem:[#allocation5] sm:$0xff]  ;;  %v527_v4 = vpack.c.bf16 %v87_v2, %v85_v1  ;;  %v86_v5 = vld [vmem:[#allocation5 + $0x10] sm:$0xff]  ;;  %v89_v6 = vld [vmem:[#allocation5 + $0x28] sm:$0xff]  ;;  %s772_s8 = smov [#allocation10]  }
  0x4c   :  { %v91_v7 = vld [vmem:[#allocation5 + $0x38] sm:$0xff]  ;;  %v529_v8 = vpack.c.bf16 %v86_v5, %v84_v3  ;;  %v88_v10 = vld [vmem:[#allocation5 + $0x20] sm:$0xff]  ;;  %v90_v11 = vld [vmem:[#allocation5 + $0x30] sm:$0xff]  ;;  %s472_s9 = sshll.u32 %s772_s8, 4  ;;  %s473_s9 = int_to_ptr.vmem [resolvable:$true] %s472_s9 }
  0x4d   :  { %v531_v9 = vpack.c.bf16 %v91_v7, %v89_v6  ;;  %528 = vmatprep.subr.bf16.mxu0 %v527_v4  ;;  %v193_v12 = vld [vmem:[#allocation7 + $0x8] sm:$0xff]  ;;  %v195_v13 = vld [vmem:[#allocation7 + $0x18] sm:$0xff]  ;;  %v533_v14 = vpack.c.bf16 %v90_v11, %v88_v10  ;;  %v192_v16 = vld [vmem:[#allocation7] sm:$0xff]  ;;  %s733_s10 = scalar_lea.vmem %s473_s9, 256  ;;  %p738_p5 = scmp.lt.s32.totalorder %s473_s9, %s473_s9 }
  0x4e   :  { %530 = vmatpush1.bf16.msra.mxu0 %v529_v8  ;;  %v535_v15 = vpack.c.bf16 %v195_v13, %v193_v12  ;;  %v194_v17 = vld [vmem:[#allocation7 + $0x10] sm:$0xff]  ;;  %v197_v18 = vld [vmem:[#allocation7 + $0x28] sm:$0xff]  ;;  %v199_v20 = vld [vmem:[#allocation7 + $0x38] sm:$0xff]  ;;  %p734_p4 = scmp.ne.s32.totalorder %s473_s9, %s733_s10  ;;  %p739_p6 = scmp.lt.s32.totalorder %s733_s10, %s733_s10 }
  0x4f   :  { %532 = vmatprep.subr.bf16.mxu0 %v531_v9  ;;  %v537_v19 = vpack.c.bf16 %v194_v17, %v192_v16  ;;  %v196_v21 = vld [vmem:[#allocation7 + $0x20] sm:$0xff]  ;;  %v198_v22 = vld [vmem:[#allocation7 + $0x30] sm:$0xff]  ;;  %v539_v23 = vpack.c.bf16 %v199_v20, %v197_v18  ;;  %v201_v24 = vld [vmem:[#allocation7 + $0x48] sm:$0xff] }
  0x50   :  { %536 = vmatprep.subr.bf16.mxu1 %v535_v15  ;;  %v203_v25 = vld [vmem:[#allocation7 + $0x58] sm:$0xff]  ;;  %v541_v26 = vpack.c.bf16 %v198_v22, %v196_v21  ;;  %v82_v27 = vld [vmem:[#allocation2] sm:$0xff]  ;;  %v200_v29 = vld [vmem:[#allocation7 + $0x40] sm:$0xff]  ;;  %p740_p7 = por %p739_p6, %p738_p5 }
  0x51   :  { %538 = vmatpush1.bf16.msra.mxu1 %v537_v19  ;;  %v543_v28 = vpack.c.bf16 %v203_v25, %v201_v24  ;;  %v202_v30 = vld [vmem:[#allocation7 + $0x50] sm:$0xff]  ;;  %v205_v31 = vld [vmem:[#allocation7 + $0x68] sm:$0xff]  ;;  %v207_v32 = vld [vmem:[#allocation7 + $0x78] sm:$0xff] }
  0x52   :  { %534 = vmatpush1.bf16.msra.mxu0 %v533_v14  ;;  %540 = vmatprep.subr.bf16.mxu1 %v539_v23  ;;  %v545_v33 = vpack.c.bf16 %v202_v30, %v200_v29  ;;  %v83_v34 = vld [vmem:[#allocation2 + $0x8] sm:$0xff]  ;;  %v547_v35 = vpack.c.bf16 %v207_v32, %v205_v31  ;;  %v204_v36 = vld [vmem:[#allocation7 + $0x60] sm:$0xff]  ;;  %v206_v37 = vld [vmem:[#allocation7 + $0x70] sm:$0xff]  ;;  %p741_p8 = pnand %p740_p7, %p734_p4 }
  0x53   :  { %v209_v38 = vld [vmem:[#allocation7 + $0x88] sm:$0xff]  ;;  %v211_v39 = vld [vmem:[#allocation7 + $0x98] sm:$0xff]  ;;  %v549_v40 = vpack.c.bf16 %v206_v37, %v204_v36  ;;  %v208_v42 = vld [vmem:[#allocation7 + $0x80] sm:$0xff] }
  0x54   :  { %v551_v41 = vpack.c.bf16 %v211_v39, %v209_v38  ;;  %v210_v43 = vld [vmem:[#allocation7 + $0x90] sm:$0xff]  ;;  %v213_v44 = vld [vmem:[#allocation7 + $0xa8] sm:$0xff]  ;;  %v215_v45 = vld [vmem:[#allocation7 + $0xb8] sm:$0xff] }
  0x55   :  { %486 = vmatmul.mubr.msk.f32.vlgmr.msra.gmra.mrb[0].mxu0 %vm104_vm0, %v82_v27  ;;  %542 = vmatpush1.bf16.msra.mxu1 %v541_v26  ;;  %v553_v46 = vpack.c.bf16 %v210_v43, %v208_v42  ;;  %v555_v47 = vpack.c.bf16 %v215_v45, %v213_v44  ;;  %v212_v48 = vld [vmem:[#allocation7 + $0xa0] sm:$0xff]  ;;  %v214_v49 = vld [vmem:[#allocation7 + $0xb0] sm:$0xff]  ;;  %v217_v50 = vld [vmem:[#allocation7 + $0xc8] sm:$0xff] }
  0x56   :  { %181 = vmatprep.mubr.f32.mxu0 %v771_v0  ;;  %544 = vmatprep.subr.bf16.mxu1 %v543_v28  ;;  %v219_v51 = vld [vmem:[#allocation7 + $0xd8] sm:$0xff]  ;;  %v557_v52 = vpack.c.bf16 %v214_v49, %v212_v48  ;;  %v216_v54 = vld [vmem:[#allocation7 + $0xc0] sm:$0xff]  ;;  %v218_v55 = vld [vmem:[#allocation7 + $0xd0] sm:$0xff] }
  0x57   :  { %v559_v53 = vpack.c.bf16 %v219_v51, %v217_v50  ;;  %v221_v56 = vld [vmem:[#allocation7 + $0xe8] sm:$0xff]  ;;  %v223_v57 = vld [vmem:[#allocation7 + $0xf8] sm:$0xff]  ;;  %v561_v58 = vpack.c.bf16 %v218_v55, %v216_v54  ;;  %v220_v60 = vld [vmem:[#allocation7 + $0xe0] sm:$0xff] }
  0x58   :  { %v563_v59 = vpack.c.bf16 %v223_v57, %v221_v56  ;;  %v222_v61 = vld [vmem:[#allocation7 + $0xf0] sm:$0xff]  ;;  %v225_v62 = vld [vmem:[#allocation7 + $0x108] sm:$0xff]  ;;  %v227_v63 = vld [vmem:[#allocation7 + $0x118] sm:$0xff] }
  0x59   :  { %487 = vmatmul.mubr.msk.f32.gmra.mrb[2].mxu0 %vm104_vm0, %v83_v34  ;;  %546 = vmatpush1.bf16.msra.mxu1 %v545_v33  ;;  %v565_v0 = vpack.c.bf16 %v222_v61, %v220_v60  ;;  %v567_v1 = vpack.c.bf16 %v227_v63, %v225_v62  ;;  %v224_v2 = vld [vmem:[#allocation7 + $0x100] sm:$0xff]  ;;  %v226_v3 = vld [vmem:[#allocation7 + $0x110] sm:$0xff]  ;;  %v229_v4 = vld [vmem:[#allocation7 + $0x128] sm:$0xff] }
  0x5a   :  { %548 = vmatprep.subr.bf16.mxu1 %v547_v35  ;;  %v231_v5 = vld [vmem:[#allocation7 + $0x138] sm:$0xff]  ;;  %v569_v6 = vpack.c.bf16 %v226_v3, %v224_v2  ;;  %v228_v8 = vld [vmem:[#allocation7 + $0x120] sm:$0xff]  ;;  %v230_v9 = vld [vmem:[#allocation7 + $0x130] sm:$0xff] }
  0x5b   :  { %v571_v7 = vpack.c.bf16 %v231_v5, %v229_v4  ;;  %v233_v10 = vld [vmem:[#allocation7 + $0x148] sm:$0xff]  ;;  %v235_v11 = vld [vmem:[#allocation7 + $0x158] sm:$0xff]  ;;  %v573_v12 = vpack.c.bf16 %v230_v9, %v228_v8  ;;  %v232_v14 = vld [vmem:[#allocation7 + $0x140] sm:$0xff] }
  0x5c   :  { %v575_v13 = vpack.c.bf16 %v235_v11, %v233_v10  ;;  %v234_v15 = vld [vmem:[#allocation7 + $0x150] sm:$0xff]  ;;  %v237_v16 = vld [vmem:[#allocation7 + $0x168] sm:$0xff]  ;;  %v239_v17 = vld [vmem:[#allocation7 + $0x178] sm:$0xff] }
  0x5d   :  { %550 = vmatpush1.bf16.msra.mxu1 %v549_v40  ;;  %v577_v18 = vpack.c.bf16 %v234_v15, %v232_v14  ;;  %v579_v19 = vpack.c.bf16 %v239_v17, %v237_v16  ;;  %v236_v20 = vld [vmem:[#allocation7 + $0x160] sm:$0xff]  ;;  %v238_v21 = vld [vmem:[#allocation7 + $0x170] sm:$0xff]  ;;  %v241_v22 = vld [vmem:[#allocation7 + $0x188] sm:$0xff] }
  0x5e   :  { %552 = vmatprep.subr.bf16.mxu1 %v551_v41  ;;  %v243_v23 = vld [vmem:[#allocation7 + $0x198] sm:$0xff]  ;;  %v581_v24 = vpack.c.bf16 %v238_v21, %v236_v20  ;;  %v240_v26 = vld [vmem:[#allocation7 + $0x180] sm:$0xff]  ;;  %v242_v27 = vld [vmem:[#allocation7 + $0x190] sm:$0xff] }
  0x5f   :  { %v583_v25 = vpack.c.bf16 %v243_v23, %v241_v22  ;;  %v245_v28 = vld [vmem:[#allocation7 + $0x1a8] sm:$0xff]  ;;  %v247_v29 = vld [vmem:[#allocation7 + $0x1b8] sm:$0xff]  ;;  %v585_v30 = vpack.c.bf16 %v242_v27, %v240_v26  ;;  %v244_v32 = vld [vmem:[#allocation7 + $0x1a0] sm:$0xff]  ;;  %v94_v22 = vlaneseq }
  0x60   :  { %v587_v31 = vpack.c.bf16 %v247_v29, %v245_v28  ;;  %v246_v33 = vld [vmem:[#allocation7 + $0x1b0] sm:$0xff]  ;;  %v249_v34 = vld [vmem:[#allocation7 + $0x1c8] sm:$0xff]  ;;  %v251_v35 = vld [vmem:[#allocation7 + $0x1d8] sm:$0xff] }
  0x61   :  { %554 = vmatpush1.bf16.msra.mxu1 %v553_v46  ;;  %v589_v36 = vpack.c.bf16 %v246_v33, %v244_v32  ;;  %v591_v37 = vpack.c.bf16 %v251_v35, %v249_v34  ;;  %v248_v38 = vld [vmem:[#allocation7 + $0x1c0] sm:$0xff]  ;;  %v250_v39 = vld [vmem:[#allocation7 + $0x1d0] sm:$0xff]  ;;  %v253_v41 = vld [vmem:[#allocation7 + $0x1e8] sm:$0xff]  ;;  %v95_v23 = vshrl.u32 %v94_v22, 7 }
  0x62   :  { %556 = vmatprep.subr.bf16.mxu1 %v555_v47  ;;  %v593_v40 = vpack.c.bf16 %v250_v39, %v248_v38  ;;  %v255_v42 = vld [vmem:[#allocation7 + $0x1f8] sm:$0xff]  ;;  %v252_v44 = vld [vmem:[#allocation7 + $0x1e0] sm:$0xff]  ;;  %v254_v45 = vld [vmem:[#allocation7 + $0x1f0] sm:$0xff] }
  0x63   :  { %v595_v43 = vpack.c.bf16 %v255_v42, %v253_v41  ;;  %v597_v46 = vpack.c.bf16 %v254_v45, %v252_v44  ;;  %v365_v47 = vld [vmem:[#allocation8 + $0x80] sm:$0xff]  ;;  %v366_v48 = vld [vmem:[#allocation8 + $0x88] sm:$0xff]  ;;  %v351_v56 = vld [vmem:[#allocation8 + $0x10] sm:$0xff]  ;;  %v100_v26 = vsub.s32 1, %v95_v23 }
  0x64   :  { %v349_v49 = vld [vmem:[#allocation8] sm:$0xff]  ;;  %v599_v50 = vpack.c.bf16 %v366_v48, %v365_v47  ;;  %v350_v51 = vld [vmem:[#allocation8 + $0x8] sm:$0xff]  ;;  %v352_v57 = vld [vmem:[#allocation8 + $0x18] sm:$0xff] }
  0x65   :  { %558 = vmatpush1.bf16.msra.mxu1 %v557_v52  ;;  %v367_v52 = vld [vmem:[#allocation8 + $0x90] sm:$0xff]  ;;  %v601_v54 = vpack.c.bf16 %v350_v51, %v349_v49  ;;  %v605_v60 = vpack.c.bf16 %v352_v57, %v351_v56  ;;  %v353_v62 = vld [vmem:[#allocation8 + $0x20] sm:$0xff]  ;;  %v354_v63 = vld [vmem:[#allocation8 + $0x28] sm:$0xff] }
  0x66   :  { %560 = vmatprep.subr.bf16.mxu1 %v559_v53  ;;  %v368_v53 = vld [vmem:[#allocation8 + $0x98] sm:$0xff]  ;;  %600 = vmatprep.subr.bf16.mxu0 %v599_v50  ;;  %v609_v2 = vpack.c.bf16 %v354_v63, %v353_v62  ;;  %v355_v4 = vld [vmem:[#allocation8 + $0x30] sm:$0xff]  ;;  %v357_v10 = vld [vmem:[#allocation8 + $0x40] sm:$0xff] }
  0x67   :  { %v603_v55 = vpack.c.bf16 %v368_v53, %v367_v52  ;;  %602 = vmatpush3.bf16.msra.mxu0 %v601_v54  ;;  %v356_v5 = vld [vmem:[#allocation8 + $0x38] sm:$0xff]  ;;  %v358_v11 = vld [vmem:[#allocation8 + $0x48] sm:$0xff]  ;;  %v359_v16 = vld [vmem:[#allocation8 + $0x50] sm:$0xff] }
  0x68   :  { %v613_v8 = vpack.c.bf16 %v356_v5, %v355_v4  ;;  %v617_v14 = vpack.c.bf16 %v358_v11, %v357_v10  ;;  %v360_v17 = vld [vmem:[#allocation8 + $0x58] sm:$0xff]  ;;  %v361_v41 = vld [vmem:[#allocation8 + $0x60] sm:$0xff]  ;;  %v362_v42 = vld [vmem:[#allocation8 + $0x68] sm:$0xff] }
  0x69   :  { %562 = vmatpush1.bf16.msra.mxu1 %v561_v58  ;;  %v369_v58 = vld [vmem:[#allocation8 + $0xa0] sm:$0xff]  ;;  %604 = vmatprep.subr.bf16.mxu0 %v603_v55  ;;  %v621_v20 = vpack.c.bf16 %v360_v17, %v359_v16  ;;  %v379_v44 = vld [vmem:[#allocation8 + $0xf0] sm:$0xff]  ;;  %v380_v45 = vld [vmem:[#allocation8 + $0xf8] sm:$0xff] }
  0x6a   :  { %564 = vmatprep.subr.bf16.mxu1 %v563_v59  ;;  %v370_v59 = vld [vmem:[#allocation8 + $0xa8] sm:$0xff]  ;;  %v363_v47 = vld [vmem:[#allocation8 + $0x70] sm:$0xff]  ;;  %v364_v48 = vld [vmem:[#allocation8 + $0x78] sm:$0xff] }
  0x6b   :  { %v607_v61 = vpack.c.bf16 %v370_v59, %v369_v58  ;;  %606 = vmatpush3.bf16.msra.mxu0 %v605_v60  ;;  %v629_v49 = vpack.c.bf16 %v364_v48, %v363_v47  ;;  %v256_v50 = vld [vmem:[%s910_s4] sm:$0x3] }
  0x6c   :  { %v265_v52 = vrot.slane %v256_v50, %v100_v26 }
  0x6d   :  { %566 = vmatpush1.bf16.msra.mxu1 %v565_v0  ;;  %v371_v0 = vld [vmem:[#allocation8 + $0xb0] sm:$0xff]  ;;  %608 = vmatprep.subr.bf16.mxu0 %v607_v61 }
  0x6e   :  { %568 = vmatprep.subr.bf16.mxu1 %v567_v1  ;;  %v372_v1 = vld [vmem:[#allocation8 + $0xb8] sm:$0xff] }
  0x6f   :  { %v611_v3 = vpack.c.bf16 %v372_v1, %v371_v0  ;;  %610 = vmatpush3.bf16.msra.mxu0 %v609_v2  ;;  %v488_v2 = vld [vmem:[%s912_s6] ss:$0 sm:$0xff] }
  0x71   :  { %570 = vmatpush1.bf16.msra.mxu1 %v569_v6  ;;  %v373_v6 = vld [vmem:[#allocation8 + $0xc0] sm:$0xff]  ;;  %612 = vmatprep.subr.bf16.mxu0 %v611_v3 }
  0x72   :  { %572 = vmatprep.subr.bf16.mxu1 %v571_v7  ;;  %v374_v7 = vld [vmem:[#allocation8 + $0xc8] sm:$0xff] }
  0x73   :  { %v615_v9 = vpack.c.bf16 %v374_v7, %v373_v6  ;;  %614 = vmatpush3.bf16.msra.mxu0 %v613_v8 }
  0x75   :  { %574 = vmatpush1.bf16.msra.mxu1 %v573_v12  ;;  %v375_v12 = vld [vmem:[#allocation8 + $0xd0] sm:$0xff]  ;;  %616 = vmatprep.subr.bf16.mxu0 %v615_v9 }
  0x76   :  { %576 = vmatprep.subr.bf16.mxu1 %v575_v13  ;;  %v376_v13 = vld [vmem:[#allocation8 + $0xd8] sm:$0xff] }
  0x77   :  { %v619_v15 = vpack.c.bf16 %v376_v13, %v375_v12  ;;  %618 = vmatpush3.bf16.msra.mxu0 %v617_v14 }
  0x79   :  { %578 = vmatpush1.bf16.msra.mxu1 %v577_v18  ;;  %v377_v18 = vld [vmem:[#allocation8 + $0xe0] sm:$0xff]  ;;  %620 = vmatprep.subr.bf16.mxu0 %v619_v15 }
  0x7a   :  { %580 = vmatprep.subr.bf16.mxu1 %v579_v19  ;;  %v378_v19 = vld [vmem:[#allocation8 + $0xe8] sm:$0xff] }
  0x7b   :  { %v623_v21 = vpack.c.bf16 %v378_v19, %v377_v18  ;;  %622 = vmatpush3.bf16.msra.mxu0 %v621_v20 }
  0x7d   :  { %582 = vmatpush1.bf16.msra.mxu1 %v581_v24  ;;  %624 = vmatprep.subr.bf16.mxu0 %v623_v21  ;;  %v96_v24 = vsub.s32 0, %v95_v23 }
  0x7e   :  { %584 = vmatprep.subr.bf16.mxu1 %v583_v25  ;;  %v92_v25 = vld [vmem:[%s908_s2] sm:$0x3] }
  0x7f   :  { %v97_v27 = vrot.slane %v92_v25, %v96_v24  ;;  %v101_v28 = vrot.slane %v92_v25, %v100_v26  ;;  %v261_v51 = vrot.slane %v256_v50, %v96_v24 }
  0x81   :  { %586 = vmatpush1.bf16.msra.mxu1 %v585_v30 }
  0x82   :  { %588 = vmatprep.subr.bf16.mxu1 %v587_v31 }
  0x85   :  { %590 = vmatpush1.bf16.msra.mxu1 %v589_v36 }
  0x86   :  { %592 = vmatprep.subr.bf16.mxu1 %v591_v37 }
  0x89   :  { %594 = vmatpush1.bf16.msra.mxu1 %v593_v40 }
  0x8a   :  { %596 = vmatprep.subr.bf16.mxu1 %v595_v43  ;;  %v625_v43 = vpack.c.bf16 %v362_v42, %v361_v41 }
  0x8c   :  { %626 = vmatpush3.bf16.msra.mxu0 %v625_v43 }
  0x8d   :  { %598 = vmatpush1.bf16.msra.mxu1 %v597_v46  ;;  %v627_v46 = vpack.c.bf16 %v380_v45, %v379_v44 }
  0x8f   :  { %628 = vmatprep.subr.bf16.mxu0 %v627_v46 }
  0x90   :  { %630 = vmatpush3.bf16.msra.mxu0 %v629_v49 }
 0x128   :  { %v177_v29 = vpop.f32.mrb[0].mxu0 }
 0x129   :  { %v178_v30 = vadd.f32 %v177_v29, %v97_v27  ;;  %v179_v31 = vpop.f32.mrb[1].mxu0 }
 0x12a   :  { %v180_v32 = vadd.f32 %v179_v31, %v101_v28 }
 0x12b   :  { %v188_v35 = vmax.f32 %v178_v30, 0.0 }
 0x12c   :  { %v183_v33 = vpop.f32.mrb[2].mxu0  ;;  %v189_v34 = vmax.f32 %v180_v32, 0.0 }
 0x12d   :  { %v184_v36 = vadd.f32 %v183_v33, %v97_v27  ;;  %v185_v37 = vpop.f32.mrb[3].mxu0 }
 0x12e   :  { %v186_v38 = vadd.f32 %v185_v37, %v101_v28  ;;  %332 = vmatprep.mubr.f32.mxu1 %v189_v34 }
 0x12f   :  { %333 = vmatmul.mubr.f32.vlgmr.msra.gmra.mrb[0].mxu1 %v188_v35  ;;  %v190_v40 = vmax.f32 %v184_v36, 0.0 }
 0x130   :  { %v191_v39 = vmax.f32 %v186_v38, 0.0 }
 0x132   :  { %338 = vmatprep.mubr.f32.mxu1 %v191_v39 }
 0x133   :  { %339 = vmatmul.mubr.f32.gmra.mrb[2].mxu1 %v190_v40 }
 0x202   :  { %v334_v53 = vpop.f32.mrb[0].mxu1 }
 0x203   :  { %v335_v54 = vadd.f32 %v334_v53, %v261_v51  ;;  %v336_v55 = vpop.f32.mrb[1].mxu1 }
 0x204   :  { %v337_v56 = vadd.f32 %v336_v55, %v265_v52 }
 0x205   :  { %v345_v59 = vmax.f32 %v335_v54, 0.0 }
 0x206   :  { %v346_v57 = vmax.f32 %v337_v56, 0.0  ;;  %v340_v58 = vpop.f32.mrb[2].mxu1 }
 0x207   :  { %v341_v60 = vadd.f32 %v340_v58, %v261_v51  ;;  %v342_v61 = vpop.f32.mrb[3].mxu1 }
 0x208   :  { %v343_v62 = vadd.f32 %v342_v61, %v265_v52  ;;  %452 = vmatprep.mubr.f32.mxu0 %v346_v57 }
 0x209   :  { %453 = vmatmul.mubr.f32.vlgmr.msra.gmra.mrb[4].mxu0 %v345_v59  ;;  %v347_v0 = vmax.f32 %v341_v60, 0.0 }
 0x20a   :  { %v348_v63 = vmax.f32 %v343_v62, 0.0 }
 0x20c   :  { %457 = vmatprep.mubr.f32.mxu0 %v348_v63 }
 0x20d   :  { %458 = vmatmul.mubr.f32.gmra.mrb[6].mxu0 %v347_v0 }
 0x2dc   :  { %v521_v1 = vpop.f32.mrb[4].mxu0 }
 0x2dd   :  { %v522_v3 = vpop.f32.mrb[5].mxu0 }
 0x2de   :  { %v523_v4 = vadd.f32 %v522_v3, %v521_v1 }
 0x2e0   :  { %v455_v5 = vadd.f32 %v523_v4, %v488_v2  ;;  %v524_v6 = vpop.f32.mrb[6].mxu0 }
 0x2e1   :  { %v525_v7 = vpop.f32.mrb[7].mxu0 }
 0x2e2   :  { %641 = vtanh.f32 %v455_v5  ;;  %v526_v8 = vadd.f32 %v525_v7, %v524_v6 }
 0x2e4   :  { %v460_v9 = vadd.f32 %v526_v8, %v488_v2 }
 0x2e6   :  { %643 = vtanh.f32 %v460_v9 }
 0x2ec   :  { %v642_v10 = vpop.eup %641 }
 0x2ed   :  { %465 = vst [vmem:[#allocation10] sm:$0xff] %v642_v10 }
 0x2f0   :  { %v644_v11 = vpop.eup %643 }
 0x2f1   :  { %466 = vst [vmem:[#allocation10 + $0x8] sm:$0xff] %v644_v11 }
 0x2f2   :  { %744 = shalt.err (!%p741_p8)
}
 0x2f3   :  { %s745_s14 = scalar_lea.hbm %s913_s7, 256 }
 0x2f4   :  { %p746_p9 = scmp.ne.s32.totalorder %s913_s7, %s745_s14  ;;  %p749_p10 = scmp.lt.u32.totalorder %s745_s14, %s913_s7 }
 0x2f6   :  { %p751_p11 = pnand %p749_p10, %p746_p9 }
 0x2f8   :  { %754 = shalt.err (!%p751_p11)
}
 0x2f9   :  { %478 = dma.vmem_to_hbm [thread:$0]  %s473_s9, 256, %s913_s7, [#allocation4], %s767_s1, %s767_s1, %s768_s25  }
 0x2fa   :  { %761 = dma.done.wait [#allocation4], 256  }
 0x2fb   :  { %762 = vsyncadd [#allocation4], 4294967040 }
 0x2fc   :  { %482 = vsyncpa [#allocation3], 1 }
 0x2fd   :  { %483 = vsyncpa [#allocation6], 1 }
 0x2fe   :  { %484 = vsyncpa [#allocation9], 1 }
 0x2ff   :  { %485 = vsyncpa [#allocation4], 1 }

</bundles_post_ra>
